<compile_context>
chip_gen: v7x
topology: tpu7x:2x2x1
jax: 0.10.0
libtpu: 0.0.40
codegen_flags: <defaults>
</compile_context>

<pallas_src>
import functools

import jax
import jax.numpy as jnp
from jax.experimental import pallas as pl
from jax.experimental.pallas import tpu as pltpu


# ----------------------------- kernel body -----------------------------------

def _adain_kernel(x_ref, w_ref, b_ref, o_ref, *, eps, row_tile):
    """x_ref: (TR, M) tile of the (N, H*W) view (TR instances on sublanes,
    M = H*W spatial elements on lanes).  w_ref/b_ref: full (Np, 1) VMEM-resident
    per-row affine, sliced by grid step."""
    row0 = pl.multiple_of(pl.program_id(0) * row_tile, row_tile)

    x = x_ref[...].astype(jnp.float32)                     # (TR, M) f32 compute
    mean = jnp.mean(x, axis=1, keepdims=True)              # (TR, 1) XLU reduce
    xc = x - mean
    var = jnp.mean(xc * xc, axis=1, keepdims=True)         # biased var (denominator = M)
    inv = jax.lax.rsqrt(var + eps)                         # EUP rsqrt

    w = w_ref[pl.ds(row0, row_tile), :]                    # (TR, 1)
    b = b_ref[pl.ds(row0, row_tile), :]                    # (TR, 1)
    scale = inv * w                                        # fold affine into one scale
    o_ref[...] = (xc * scale + b).astype(o_ref.dtype)


# ----------------------------- tile selection ---------------------------------

def _choose_row_tile(n_rows, m, itemsize):
    """Pick the instance-axis tile: ~2 MiB x-blocks (in+out double-buffered ~8 MiB),
    multiple of the sublane packing for the dtype, and small enough to keep >= 4 grid
    steps when there is enough work (megacore sharding on v7x)."""
    pack = max(8, 32 // itemsize)                # 8 f32, 16 bf16, 32 int8/fp8
    target_bytes = 2 << 20                       # ~2 MiB per x block
    tr = max(pack, (target_bytes // max(1, m * itemsize)) // pack * pack)
    if n_rows > 4 * pack:                        # keep >= ~4 grid steps
        quarter = -(-n_rows // 4)
        quarter = -(-quarter // pack) * pack
        tr = min(tr, quarter)
    tr = min(tr, -(-n_rows // pack) * pack)      # never exceed pack-rounded row count
    return tr


# ----------------------------- wrapper ----------------------------------------

def adaptive_instance_norm_2d(x, weight, bias, *, eps=1e-5, row_tile=None):
    """AdaIN forward.  x: (B, C, H, W); weight, bias: (B*C,) assigned externally."""
    if weight is None or bias is None:
        raise ValueError("Please assign weight and bias before calling AdaIN!")
    B, C, H, W = x.shape
    N, M = B * C, H * W
    itemsize = jnp.dtype(x.dtype).itemsize

    tr = int(row_tile) if row_tile is not None else _choose_row_tile(N, M, itemsize)
    n_grid = -(-N // tr)                         # cdiv
    n_rows_pad = n_grid * tr                     # only the tiny w/b arrays get padded

    # (B, C, H, W) -> (B*C, H*W): free reshape of a contiguous array.  x is NOT padded;
    # the last partial row-block (if any) uses Pallas' masked loads/stores.
    xr = x.reshape(N, M)
    w = jnp.asarray(weight, jnp.float32).reshape(N, 1)
    b = jnp.asarray(bias, jnp.float32).reshape(N, 1)
    if n_rows_pad != N:
        w = jnp.pad(w, ((0, n_rows_pad - N), (0, 0)))
        b = jnp.pad(b, ((0, n_rows_pad - N), (0, 0)))

    out = pl.pallas_call(
        functools.partial(_adain_kernel, eps=float(eps), row_tile=tr),
        out_shape=jax.ShapeDtypeStruct((N, M), x.dtype),
        grid=(n_grid,),
        in_specs=[
            pl.BlockSpec((tr, M), lambda i: (i, 0)),            # activations tile
            pl.BlockSpec((n_rows_pad, 1), lambda i: (0, 0)),    # weight: VMEM-resident
            pl.BlockSpec((n_rows_pad, 1), lambda i: (0, 0)),    # bias:   VMEM-resident
        ],
        out_specs=pl.BlockSpec((tr, M), lambda i: (i, 0)),
        compiler_params=pltpu.CompilerParams(
            dimension_semantics=("parallel",),                   # rows shard across TCs
            vmem_limit_bytes=48 * 1024 * 1024,                   # headroom for huge H*W
        ),
        cost_estimate=pl.CostEstimate(
            flops=6 * N * M,
            transcendentals=N,
            bytes_accessed=2 * N * M * itemsize + 2 * n_rows_pad * 4,
        ),
    )(xr, w, b)

    return out.reshape(B, C, H, W)


# ----------------------------- pure-JAX reference ------------------------------

def _reference(x, weight, bias, eps=1e-5):
    B, C, H, W = x.shape
    xr = x.reshape(B * C, H * W).astype(jnp.float32)
    mean = xr.mean(axis=1, keepdims=True)
    var = ((xr - mean) ** 2).mean(axis=1, keepdims=True)
    y = (xr - mean) / jnp.sqrt(var + eps)
    y = y * weight.reshape(-1, 1).astype(jnp.float32) + bias.reshape(-1, 1).astype(jnp.float32)
    return y.reshape(B, C, H, W).astype(x.dtype)


# ----------------------------- main --------------------------------------------

if __name__ == "__main__":
    key = jax.random.PRNGKey(0)

    # Case 1: canonical small shape (N = B*C divides the tile evenly, f32).
    B, C, H, W = 2, 4, 16, 16
    kx, kw, kb, key = jax.random.split(key, 4)
    x = jax.random.normal(kx, (B, C, H, W), jnp.float32)
    weight = 1.0 + 0.1 * jax.random.normal(kw, (B * C,), jnp.float32)
    bias = 0.1 * jax.random.normal(kb, (B * C,), jnp.float32)

    out = adaptive_instance_norm_2d(x, weight, bias, eps=1e-5)
    out = jax.block_until_ready(out)
    assert out.shape == (B, C, H, W), out.shape
    ref = _reference(x, weight, bias, eps=1e-5)
    assert jnp.allclose(out, ref, atol=1e-4, rtol=1e-4), float(jnp.max(jnp.abs(out - ref)))

    # Case 2: N not a multiple of the tile (masked last block) + bf16 input
    # (exercises dtype-aware sublane packing).
    B2, C2 = 2, 3
    kx2, kw2, kb2, key = jax.random.split(key, 4)
    x2 = jax.random.normal(kx2, (B2, C2, H, W), jnp.float32).astype(jnp.bfloat16)
    w2 = 1.0 + 0.1 * jax.random.normal(kw2, (B2 * C2,), jnp.float32)
    b2 = 0.1 * jax.random.normal(kb2, (B2 * C2,), jnp.float32)

    out2 = adaptive_instance_norm_2d(x2, w2, b2, eps=1e-5)
    out2 = jax.block_until_ready(out2)
    assert out2.shape == (B2, C2, H, W), out2.shape
    ref2 = _reference(x2, w2, b2, eps=1e-5)
    assert jnp.allclose(out2.astype(jnp.float32), ref2.astype(jnp.float32),
                        atol=3e-2, rtol=3e-2), float(
        jnp.max(jnp.abs(out2.astype(jnp.float32) - ref2.astype(jnp.float32))))

    print("KERNEL_OK")
</pallas_src>

<mosaic_0001>
module attributes {stable_mosaic.version = 11 : i64} {
  func.func @_adain_kernel(%arg0: i32, %arg1: memref<8x256xf32, #tpu.memory_space<vmem>>, %arg2: memref<8x1xf32, #tpu.memory_space<vmem>>, %arg3: memref<8x1xf32, #tpu.memory_space<vmem>>, %arg4: memref<8x256xf32, #tpu.memory_space<vmem>>) attributes {dimension_semantics = [#tpu.dimension_semantics<parallel>], iteration_bounds = array<i64: 1>, scalar_prefetch = 0 : i64, scratch_operands = 0 : i64, tpu.core_type = #tpu.core_type<tc>, window_params = [{transform_indices = @transform_0, window_bounds = array<i64: 8, 256>}, {pipeline_mode = #tpu.pipeline_mode<synchronous>, transform_indices = @transform_1, window_bounds = array<i64: 8, 1>}, {pipeline_mode = #tpu.pipeline_mode<synchronous>, transform_indices = @transform_2, window_bounds = array<i64: 8, 1>}, {transform_indices = @transform_3, window_bounds = array<i64: 8, 256>}]} {
    %c8_i32 = arith.constant 8 : i32
    %0 = arith.muli %arg0, %c8_i32 : i32
    %1 = tpu.assume_multiple %0, 8 : i32
    %c0 = arith.constant 0 : index
    %c0_0 = arith.constant 0 : index
    %2 = vector.load %arg1[%c0, %c0_0] : memref<8x256xf32, #tpu.memory_space<vmem>>, vector<8x256xf32>
    %cst = arith.constant dense<0.000000e+00> : vector<8xf32>
    %3 = vector.multi_reduction <add>, %2, %cst [1] : vector<8x256xf32> to vector<8xf32>
    %4 = vector.shape_cast %3 : vector<8xf32> to vector<8x1xf32>
    %cst_1 = arith.constant 2.560000e+02 : f32
    %5 = vector.broadcast %cst_1 : f32 to vector<8x1xf32>
    %6 = arith.divf %4, %5 : vector<8x1xf32>
    %7 = vector.broadcast %6 : vector<8x1xf32> to vector<8x256xf32>
    %8 = arith.subf %2, %7 : vector<8x256xf32>
    %9 = arith.mulf %8, %8 : vector<8x256xf32>
    %cst_2 = arith.constant dense<0.000000e+00> : vector<8xf32>
    %10 = vector.multi_reduction <add>, %9, %cst_2 [1] : vector<8x256xf32> to vector<8xf32>
    %11 = vector.shape_cast %10 : vector<8xf32> to vector<8x1xf32>
    %cst_3 = arith.constant 2.560000e+02 : f32
    %12 = vector.broadcast %cst_3 : f32 to vector<8x1xf32>
    %13 = arith.divf %11, %12 : vector<8x1xf32>
    %cst_4 = arith.constant 9.99999974E-6 : f32
    %14 = vector.broadcast %cst_4 : f32 to vector<8x1xf32>
    %15 = arith.addf %13, %14 : vector<8x1xf32>
    %16 = math.rsqrt %15 : vector<8x1xf32>
    %17 = arith.index_cast %1 : i32 to index
    %c0_5 = arith.constant 0 : index
    %18 = vector.load %arg2[%17, %c0_5] : memref<8x1xf32, #tpu.memory_space<vmem>>, vector<8x1xf32>
    %19 = arith.index_cast %1 : i32 to index
    %c0_6 = arith.constant 0 : index
    %20 = vector.load %arg3[%19, %c0_6] : memref<8x1xf32, #tpu.memory_space<vmem>>, vector<8x1xf32>
    %21 = arith.mulf %16, %18 : vector<8x1xf32>
    %22 = vector.broadcast %21 : vector<8x1xf32> to vector<8x256xf32>
    %23 = arith.mulf %8, %22 : vector<8x256xf32>
    %24 = vector.broadcast %20 : vector<8x1xf32> to vector<8x256xf32>
    %25 = arith.addf %23, %24 : vector<8x256xf32>
    %c0_7 = arith.constant 0 : index
    %c0_8 = arith.constant 0 : index
    %26 = vector.load %arg4[%c0_7, %c0_8] : memref<8x256xf32, #tpu.memory_space<vmem>>, vector<8x256xf32>
    tpu.vector_store %arg4[%c0_7, %c0_8], %25 {strides = array<i32>} : memref<8x256xf32, #tpu.memory_space<vmem>>, vector<8x256xf32>,
    return
  }
  func.func @transform_0(%arg0: i32) -> (i32, i32) {
    %c0_i32 = arith.constant 0 : i32
    %c0_i32_0 = arith.constant 0 : i32
    return %arg0, %c0_i32 : i32, i32
  }
  func.func @transform_1(%arg0: i32) -> (i32, i32) {
    %c0_i32 = arith.constant 0 : i32
    %c0_i32_0 = arith.constant 0 : i32
    %c0_i32_1 = arith.constant 0 : i32
    return %c0_i32, %c0_i32_0 : i32, i32
  }
  func.func @transform_2(%arg0: i32) -> (i32, i32) {
    %c0_i32 = arith.constant 0 : i32
    %c0_i32_0 = arith.constant 0 : i32
    %c0_i32_1 = arith.constant 0 : i32
    return %c0_i32, %c0_i32_0 : i32, i32
  }
  func.func @transform_3(%arg0: i32) -> (i32, i32) {
    %c0_i32 = arith.constant 0 : i32
    %c0_i32_0 = arith.constant 0 : i32
    return %arg0, %c0_i32 : i32, i32
  }
}

</mosaic_0001>

<bundles_post_ra>
// kernel: tpu_custom_call.1
= control target key start
LH: loop header
LB: loop body
LE: loop exit
PB: predicated region body
PF: predicated region fallthrough
CT: control target
= control target key end

     0   :  { %s144_s0 = inlined_call_operand.vmem [shape: f32[8,256], index: 0, kind: input, shape index: {}]   ;;  %s145_s1 = inlined_call_operand.vmem [shape: f32[8,1], index: 1, kind: input, shape index: {}]   ;;  %s146_s2 = inlined_call_operand.vmem [shape: f32[8,1], index: 2, kind: input, shape index: {}]   ;;  %s147_s3 = inlined_call_operand.hbm [shape: f32[8,256], index: 3, kind: output, shape index: {}]  }
   0x1   :  { %v16_v0 = vld [vmem:[%s144_s0] sm:$0xff]  ;;  %v17_v1 = vld [vmem:[%s144_s0 + $0x8] sm:$0xff] }
   0x2   :  { %8 = vsyncpa [#allocation3], 0  ;;  %v18_v2 = vadd.f32 %v17_v1, %v16_v0  ;;  %v98_v10 = vmov 0   ;;  %v34_v14 = vld [vmem:[%s145_s1] sm:$0xff]  ;;  %s99_s19 = smov [#allocation2]  }
   0x3   :  { %70 = vset.pattern.permute.xlu1 %v98_v10  ;;  %71 = vset.pattern.permute.xlu0 %v98_v10  ;;  %v36_v17 = vld [vmem:[%s146_s2] sm:$0xff]  ;;  %s60_s20 = sshll.u32 %s99_s19, 4  ;;  %s61_s20 = int_to_ptr.vmem [resolvable:$true] %s60_s20 }
   0x4   :  { %19 = vadd.xlane.f32.xlu0 %v18_v2  ;;  %s74_s1 = scalar_lea.vmem %s61_s20, 256  ;;  %p79_p1 = scmp.lt.s32.totalorder %s61_s20, %s61_s20 }
   0x5   :  { %p75_p0 = scmp.ne.s32.totalorder %s61_s20, %s74_s1  ;;  %p80_p2 = scmp.lt.s32.totalorder %s74_s1, %s74_s1 }
   0x7   :  { %p81_p3 = por %p80_p2, %p79_p1 }
   0x9   :  { %p82_p4 = pnand %p81_p3, %p75_p0 }
  0x91   :  { %v20_v3 = vpop.xlane.xlu0 %19 }
  0x92   :  { %v22_v4 = vmul.f32 0.00390625, %v20_v3 }
  0x94   :  { %v23_v5 = vsub.f32 %v16_v0, %v22_v4  ;;  %v24_v6 = vsub.f32 %v17_v1, %v22_v4 }
  0x96   :  { %v25_v7 = vmul.f32 %v23_v5, %v23_v5  ;;  %v26_v8 = vmul.f32 %v24_v6, %v24_v6 }
  0x98   :  { %v27_v9 = vadd.f32 %v26_v8, %v25_v7 }
  0x9a   :  { %28 = vadd.xlane.f32.xlu0 %v27_v9 }
 0x127   :  { %v29_v11 = vpop.xlane.xlu0 %28 }
 0x128   :  { %v30_v12 = vmul.f32 0.00390625, %v29_v11 }
 0x12a   :  { %v31_v13 = vadd.f32 1e-05, %v30_v12 }
 0x12c   :  { %72 = vrsqrt.f32 %v31_v13 }
 0x136   :  { %v73_v15 = vpop.eup %72 }
 0x137   :  { %v37_v16 = vmul.f32 %v73_v15, %v34_v14 }
 0x139   :  { %40 = vperm.xlu1 %70, %v37_v16  }
 0x13d   :  { %47 = vperm.xlu1 %70, %v36_v17  }
 0x1b8   :  { %v41_v18 = vpop.permute.xlu1 %40 }
 0x1b9   :  { %v43_v19 = vmul.f32 %v41_v18, %v23_v5  ;;  %v44_v20 = vmul.f32 %v41_v18, %v24_v6 }
 0x1bc   :  { %v48_v21 = vpop.permute.xlu1 %47 }
 0x1bd   :  { %v50_v22 = vadd.f32 %v48_v21, %v43_v19  ;;  %v51_v23 = vadd.f32 %v48_v21, %v44_v20 }
 0x1bf   :  { %52 = vst [vmem:[#allocation2] sm:$0xff] %v50_v22  ;;  %53 = vst [vmem:[#allocation2 + $0x8] sm:$0xff] %v51_v23 }
 0x1c0   :  { %85 = shalt.err (!%p82_p4)
}
 0x1c1   :  { %s86_s22 = scalar_lea.hbm %s147_s3, 256 }
 0x1c2   :  { %p87_p5 = scmp.ne.s32.totalorder %s147_s3, %s86_s22  ;;  %p90_p6 = scmp.lt.u32.totalorder %s86_s22, %s147_s3 }
 0x1c4   :  { %p92_p7 = pnand %p90_p6, %p87_p5 }
 0x1c6   :  { %95 = shalt.err (!%p92_p7)
}
 0x1c7   :  { %63 = dma.vmem_to_hbm [thread:$0]  %s61_s20, 256, %s147_s3, [#allocation3]  }
 0x1c8   :  { %96 = dma.done.wait [#allocation3], 256  }
 0x1c9   :  { %97 = vsyncadd [#allocation3], 4294967040 }
 0x1ca   :  { %67 = vsyncpa [#allocation3], 1 }

</bundles_post_ra>
